<compile_context>
chip_gen: v7x
topology: tpu7x:2x2x1
jax: 0.10.0
libtpu: 0.0.40
codegen_flags: <defaults>
</compile_context>

<pallas_src>
import math

import jax
import jax.numpy as jnp
from jax.experimental import pallas as pl
from jax.experimental.pallas import tpu as pltpu

# ---------------- small config consistent with the PyTorch module ------------
BLOCK_SIZE = 8      # config.block_size  (num_props = 0, scaffold_maxlen = 0 -> mask = tril(T))
N_HEAD = 4          # config.n_head
N_EMBD = 32         # config.n_embd
LN_EPS = 1e-5       # torch.nn.LayerNorm default eps

_NEG_INF = -1e30    # large-negative additive mask (avoids -inf NaN edge cases)


def _gelu(x):
    # TODO(synk): torch.nn.GELU() default is the exact erf form; lax.erf is not
    # guaranteed to lower under Mosaic, so we statically use the tanh
    # approximation (max deviation ~3e-3) both in-kernel and in the reference.
    return 0.5 * x * (1.0 + jnp.tanh(0.7978845608028654 * (x + 0.044715 * x * x * x)))


def _layernorm(x, w, b):
    mu = jnp.mean(x, axis=-1, keepdims=True)
    var = jnp.mean((x - mu) ** 2, axis=-1, keepdims=True)
    return (x - mu) * jax.lax.rsqrt(var + LN_EPS) * w + b


# ---------------- the fused Pallas kernel ------------------------------------
def _block_kernel(x_ref,
                  ln1w_ref, ln1b_ref, wqkv_ref, bqkv_ref,
                  wproj_ref, bproj_ref, ln2w_ref, ln2b_ref,
                  w1_ref, b1_ref, w2_ref, b2_ref,
                  xout_ref, attn_ref):
    """Whole Block for ONE batch element; heads batched in a leading dim."""
    T, C = x_ref.shape
    H = wqkv_ref.shape[0]
    hd = C // H
    scale = 1.0 / math.sqrt(hd)

    x2 = x_ref[...]                                                  # (T, C) residual stream

    # ---- ln1 + fused per-head QKV (one head-batched matmul, one bias add) ----
    xn = _layernorm(x2, ln1w_ref[...], ln1b_ref[...])                # (T, C)
    xnb = jnp.broadcast_to(xn[None, :, :], (H, T, C))                # (H, T, C)
    qkv = jnp.einsum('htc,hce->hte', xnb, wqkv_ref[...],
                     preferred_element_type=jnp.float32) + bqkv_ref[...]   # (H, T, 3*hd)
    q = qkv[:, :, 0 * hd:1 * hd]                                     # (H, T, hd)
    k = qkv[:, :, 1 * hd:2 * hd]
    v = qkv[:, :, 2 * hd:3 * hd]

    # ---- causal self-attention, all heads batched ----
    row = jax.lax.broadcasted_iota(jnp.int32, (T, T), 0)
    col = jax.lax.broadcasted_iota(jnp.int32, (T, T), 1)
    neg_bias = jnp.where(row >= col, 0.0, _NEG_INF).astype(jnp.float32)[None, :, :]

    att = jnp.einsum('htd,hsd->hts', q, k,
                     preferred_element_type=jnp.float32) * scale + neg_bias
    att = att - jnp.max(att, axis=-1, keepdims=True)
    att = jnp.exp(att)
    att = att * pl.reciprocal(jnp.sum(att, axis=-1, keepdims=True), approx=True)
    attn_ref[...] = att[None]                                        # (1, H, T, T) == torch layout

    y = jnp.einsum('hts,hsd->htd', att, v,
                   preferred_element_type=jnp.float32)               # (H, T, hd)
    # Output projection done per head and summed over heads — equivalent to
    # concat(heads) @ Wp, but with no transpose / lane-concatenate.
    yp = jnp.einsum('htd,hdc->htc', y, wproj_ref[...],
                    preferred_element_type=jnp.float32)              # (H, T, C)
    x2 = x2 + jnp.sum(yp, axis=0) + bproj_ref[...]

    # ---- ln2 + MLP (GELU) ----
    xn2 = _layernorm(x2, ln2w_ref[...], ln2b_ref[...])
    hmid = _gelu(jnp.dot(xn2, w1_ref[...], preferred_element_type=jnp.float32)
                 + b1_ref[...])
    x2 = x2 + jnp.dot(hmid, w2_ref[...], preferred_element_type=jnp.float32) + b2_ref[...]

    xout_ref[...] = x2


# ---------------- wrapper ------------------------------------------------------
def block_forward(kp, x):
    """x: (B, T, C) float32.  Returns (x_out (B,T,C), attn (B,H,T,T))."""
    B, T, C = x.shape
    H = N_HEAD
    x2 = x.reshape(B * T, C)                  # reshape hoisted out of the kernel (free)

    ins = [x2,
           kp['ln1_w'], kp['ln1_b'], kp['w_qkv'], kp['b_qkv'],
           kp['w_proj'], kp['b_proj'], kp['ln2_w'], kp['ln2_b'],
           kp['w_fc'], kp['b_fc'], kp['w_out'], kp['b_out']]

    def rep(a):                               # weights: same full block every grid step
        nd = a.ndim
        return pl.BlockSpec(a.shape, lambda b, _nd=nd: (0,) * _nd)

    in_specs = ([pl.BlockSpec((T, C), lambda b: (b, 0))] +
                [rep(a) for a in ins[1:]])
    out_specs = (pl.BlockSpec((T, C), lambda b: (b, 0)),
                 pl.BlockSpec((1, H, T, T), lambda b: (b, 0, 0, 0)))
    out_shape = (jax.ShapeDtypeStruct((B * T, C), jnp.float32),
                 jax.ShapeDtypeStruct((B, H, T, T), jnp.float32))

    xout2, attn = pl.pallas_call(
        _block_kernel,
        grid=(B,),
        in_specs=in_specs,
        out_specs=out_specs,
        out_shape=out_shape,
        input_output_aliases={0: 0},          # residual-stream input aliases x_out
        compiler_params=pltpu.CompilerParams(
            dimension_semantics=("parallel",)),   # shard batch over v7x's 2 TensorCores
    )(*ins)

    return xout2.reshape(B, T, C), attn


# ---------------- parameters ---------------------------------------------------
def init_params(key):
    """Natural (torch-like, pre-transposed) parameters for one Block."""
    C = N_EMBD

    def normal(k, shape):
        return 0.02 * jax.random.normal(k, shape, jnp.float32)

    keys = jax.random.split(key, 6)

    def lin(k, din, dout):
        w = normal(k, (dout, din))             # torch nn.Linear layout
        return jnp.transpose(w), jnp.zeros((1, dout), jnp.float32)

    wq, bq = lin(keys[0], C, C)
    wk, bk = lin(keys[1], C, C)
    wv, bv = lin(keys[2], C, C)
    wp, bp = lin(keys[3], C, C)
    w1, b1 = lin(keys[4], C, 4 * C)
    w2, b2 = lin(keys[5], 4 * C, C)
    return dict(
        ln1_w=jnp.ones((1, C), jnp.float32), ln1_b=jnp.zeros((1, C), jnp.float32),
        ln2_w=jnp.ones((1, C), jnp.float32), ln2_b=jnp.zeros((1, C), jnp.float32),
        wq=wq, bq=bq, wk=wk, bk=bk, wv=wv, bv=bv, wp=wp, bp=bp,
        w1=w1, b1=b1, w2=w2, b2=b2)


def prepare_kernel_params(p):
    """One-time head stacking + QKV fusion for the fused kernel (free glue)."""
    C, H = N_EMBD, N_HEAD
    hd = C // H
    per_head_w, per_head_b = [], []
    for h in range(H):
        sl = slice(h * hd, (h + 1) * hd)
        per_head_w.append(jnp.concatenate(
            [p['wq'][:, sl], p['wk'][:, sl], p['wv'][:, sl]], axis=1))   # (C, 3hd)
        per_head_b.append(jnp.concatenate(
            [p['bq'][:, sl], p['bk'][:, sl], p['bv'][:, sl]], axis=1))   # (1, 3hd)
    return dict(
        ln1_w=p['ln1_w'], ln1_b=p['ln1_b'],                # (1, C)
        w_qkv=jnp.stack(per_head_w, 0),                    # (H, C, 3hd)
        b_qkv=jnp.stack(per_head_b, 0),                    # (H, 1, 3hd)
        w_proj=p['wp'].reshape(H, hd, C),                  # (H, hd, C)
        b_proj=p['bp'],                                    # (1, C)
        ln2_w=p['ln2_w'], ln2_b=p['ln2_b'],                # (1, C)
        w_fc=p['w1'], b_fc=p['b1'],                        # (C, 4C), (1, 4C)
        w_out=p['w2'], b_out=p['b2'],                      # (4C, C), (1, C)
    )


# ---------------- pure-JAX reference (sanity check) ----------------------------
def _block_reference(x, p):
    B, T, C = x.shape
    H, hd = N_HEAD, C // N_HEAD
    x2 = x.reshape(B * T, C)
    xn = _layernorm(x2, p['ln1_w'], p['ln1_b'])
    q = (xn @ p['wq'] + p['bq']).reshape(B, T, H, hd).transpose(0, 2, 1, 3)
    k = (xn @ p['wk'] + p['bk']).reshape(B, T, H, hd).transpose(0, 2, 1, 3)
    v = (xn @ p['wv'] + p['bv']).reshape(B, T, H, hd).transpose(0, 2, 1, 3)
    att = jnp.einsum('bhtd,bhsd->bhts', q, k) / math.sqrt(hd)
    mask = jnp.tril(jnp.ones((T, T), bool))
    att = jnp.where(mask, att, _NEG_INF)
    att = jax.nn.softmax(att, axis=-1)
    y = jnp.einsum('bhts,bhsd->bhtd', att, v).transpose(0, 2, 1, 3).reshape(B * T, C)
    y = y @ p['wp'] + p['bp']
    x2 = x2 + y
    xn2 = _layernorm(x2, p['ln2_w'], p['ln2_b'])
    h = _gelu(xn2 @ p['w1'] + p['b1'])
    x2 = x2 + (h @ p['w2'] + p['b2'])
    return x2.reshape(B, T, C), att


# ---------------- main ----------------------------------------------------------
if __name__ == "__main__":
    key = jax.random.PRNGKey(0)
    pkey, xkey = jax.random.split(key)
    params = init_params(pkey)
    kp = prepare_kernel_params(params)

    B, T, C = 2, BLOCK_SIZE, N_EMBD
    x = 0.1 * jax.random.normal(xkey, (B, T, C), jnp.float32)

    fwd = jax.jit(block_forward)
    x_out, attn = fwd(kp, x)
    jax.block_until_ready((x_out, attn))

    # sanity check against a pure-JAX reference
    ref_out, ref_attn = _block_reference(x, params)
    assert x_out.shape == (B, T, C)
    assert attn.shape == (B, N_HEAD, T, T)
    assert bool(jnp.allclose(x_out, ref_out, atol=2e-2, rtol=2e-2))
    assert bool(jnp.allclose(attn, ref_attn, atol=2e-2, rtol=2e-2))

    print("KERNEL_OK")
</pallas_src>

<mosaic_0001>
module attributes {stable_mosaic.version = 11 : i64} {
  func.func @_block_kernel(%arg0: i32, %arg1: memref<8x32xf32, #tpu.memory_space<vmem>>, %arg2: memref<1x32xf32, #tpu.memory_space<vmem>>, %arg3: memref<1x32xf32, #tpu.memory_space<vmem>>, %arg4: memref<4x32x24xf32, #tpu.memory_space<vmem>>, %arg5: memref<4x1x24xf32, #tpu.memory_space<vmem>>, %arg6: memref<4x8x32xf32, #tpu.memory_space<vmem>>, %arg7: memref<1x32xf32, #tpu.memory_space<vmem>>, %arg8: memref<1x32xf32, #tpu.memory_space<vmem>>, %arg9: memref<1x32xf32, #tpu.memory_space<vmem>>, %arg10: memref<32x128xf32, #tpu.memory_space<vmem>>, %arg11: memref<1x128xf32, #tpu.memory_space<vmem>>, %arg12: memref<128x32xf32, #tpu.memory_space<vmem>>, %arg13: memref<1x32xf32, #tpu.memory_space<vmem>>, %arg14: memref<8x32xf32, #tpu.memory_space<vmem>>, %arg15: memref<1x4x8x8xf32, #tpu.memory_space<vmem>>) attributes {dimension_semantics = [#tpu.dimension_semantics<parallel>], iteration_bounds = array<i64: 2>, scalar_prefetch = 0 : i64, scratch_operands = 0 : i64, tpu.core_type = #tpu.core_type<tc>, window_params = [{transform_indices = @transform_0, window_bounds = array<i64: 8, 32>}, {pipeline_mode = #tpu.pipeline_mode<synchronous>, transform_indices = @transform_1, window_bounds = array<i64: 1, 32>}, {pipeline_mode = #tpu.pipeline_mode<synchronous>, transform_indices = @transform_2, window_bounds = array<i64: 1, 32>}, {pipeline_mode = #tpu.pipeline_mode<synchronous>, transform_indices = @transform_3, window_bounds = array<i64: 4, 32, 24>}, {pipeline_mode = #tpu.pipeline_mode<synchronous>, transform_indices = @transform_4, window_bounds = array<i64: 4, 1, 24>}, {pipeline_mode = #tpu.pipeline_mode<synchronous>, transform_indices = @transform_5, window_bounds = array<i64: 4, 8, 32>}, {pipeline_mode = #tpu.pipeline_mode<synchronous>, transform_indices = @transform_6, window_bounds = array<i64: 1, 32>}, {pipeline_mode = #tpu.pipeline_mode<synchronous>, transform_indices = @transform_7, window_bounds = array<i64: 1, 32>}, {pipeline_mode = #tpu.pipeline_mode<synchronous>, transform_indices = @transform_8, window_bounds = array<i64: 1, 32>}, {pipeline_mode = #tpu.pipeline_mode<synchronous>, transform_indices = @transform_9, window_bounds = array<i64: 32, 128>}, {pipeline_mode = #tpu.pipeline_mode<synchronous>, transform_indices = @transform_10, window_bounds = array<i64: 1, 128>}, {pipeline_mode = #tpu.pipeline_mode<synchronous>, transform_indices = @transform_11, window_bounds = array<i64: 128, 32>}, {pipeline_mode = #tpu.pipeline_mode<synchronous>, transform_indices = @transform_12, window_bounds = array<i64: 1, 32>}, {transform_indices = @transform_13, window_bounds = array<i64: 8, 32>}, {transform_indices = @transform_14, window_bounds = array<i64: 1, 4, 8, 8>}]} {
    %c0 = arith.constant 0 : index
    %c0_0 = arith.constant 0 : index
    %0 = vector.load %arg1[%c0, %c0_0] : memref<8x32xf32, #tpu.memory_space<vmem>>, vector<8x32xf32>
    %c0_1 = arith.constant 0 : index
    %c0_2 = arith.constant 0 : index
    %1 = vector.load %arg2[%c0_1, %c0_2] : memref<1x32xf32, #tpu.memory_space<vmem>>, vector<1x32xf32>
    %c0_3 = arith.constant 0 : index
    %c0_4 = arith.constant 0 : index
    %2 = vector.load %arg3[%c0_3, %c0_4] : memref<1x32xf32, #tpu.memory_space<vmem>>, vector<1x32xf32>
    %cst = arith.constant dense<0.000000e+00> : vector<8xf32>
    %3 = vector.multi_reduction <add>, %0, %cst [1] : vector<8x32xf32> to vector<8xf32>
    %4 = vector.shape_cast %3 : vector<8xf32> to vector<8x1xf32>
    %cst_5 = arith.constant 3.200000e+01 : f32
    %5 = vector.broadcast %cst_5 : f32 to vector<8x1xf32>
    %6 = arith.divf %4, %5 : vector<8x1xf32>
    %7 = vector.broadcast %6 : vector<8x1xf32> to vector<8x32xf32>
    %8 = arith.subf %0, %7 : vector<8x32xf32>
    %9 = arith.mulf %8, %8 : vector<8x32xf32>
    %cst_6 = arith.constant dense<0.000000e+00> : vector<8xf32>
    %10 = vector.multi_reduction <add>, %9, %cst_6 [1] : vector<8x32xf32> to vector<8xf32>
    %11 = vector.shape_cast %10 : vector<8xf32> to vector<8x1xf32>
    %cst_7 = arith.constant 3.200000e+01 : f32
    %12 = vector.broadcast %cst_7 : f32 to vector<8x1xf32>
    %13 = arith.divf %11, %12 : vector<8x1xf32>
    %14 = vector.broadcast %6 : vector<8x1xf32> to vector<8x32xf32>
    %15 = arith.subf %0, %14 : vector<8x32xf32>
    %cst_8 = arith.constant 9.99999974E-6 : f32
    %16 = vector.broadcast %cst_8 : f32 to vector<8x1xf32>
    %17 = arith.addf %13, %16 : vector<8x1xf32>
    %18 = math.rsqrt %17 : vector<8x1xf32>
    %19 = vector.broadcast %18 : vector<8x1xf32> to vector<8x32xf32>
    %20 = arith.mulf %15, %19 : vector<8x32xf32>
    %21 = vector.broadcast %1 : vector<1x32xf32> to vector<8x32xf32>
    %22 = arith.mulf %20, %21 : vector<8x32xf32>
    %23 = vector.broadcast %2 : vector<1x32xf32> to vector<8x32xf32>
    %24 = arith.addf %22, %23 : vector<8x32xf32>
    %25 = vector.shape_cast %24 : vector<8x32xf32> to vector<1x8x32xf32>
    %26 = vector.shape_cast %25 : vector<1x8x32xf32> to vector<1x8x32xf32>
    %27 = vector.broadcast %26 : vector<1x8x32xf32> to vector<4x8x32xf32>
    %c0_9 = arith.constant 0 : index
    %c0_10 = arith.constant 0 : index
    %c0_11 = arith.constant 0 : index
    %28 = vector.load %arg4[%c0_9, %c0_10, %c0_11] : memref<4x32x24xf32, #tpu.memory_space<vmem>>, vector<4x32x24xf32>
    "tpu.trace_start"() <{level = 10 : i32, message = "htc,hce->hte"}> : () -> ()
    %cst_12 = arith.constant dense<0.000000e+00> : vector<4x8x24xf32>
    %29 = tpu.matmul %27, %28, %cst_12 {dimension_numbers = #tpu.dot_dimension_numbers<[2], [1], [1], [2], [0, 0, 0, 1, 1, 2], [0], [0]>} : vector<4x8x32xf32>, vector<4x32x24xf32>, vector<4x8x24xf32> -> vector<4x8x24xf32>
    "tpu.trace_stop"() : () -> ()
    %c0_13 = arith.constant 0 : index
    %c0_14 = arith.constant 0 : index
    %c0_15 = arith.constant 0 : index
    %30 = vector.load %arg5[%c0_13, %c0_14, %c0_15] : memref<4x1x24xf32, #tpu.memory_space<vmem>>, vector<4x1x24xf32>
    %31 = vector.broadcast %30 : vector<4x1x24xf32> to vector<4x8x24xf32>
    %32 = arith.addf %29, %31 : vector<4x8x24xf32>
    %33 = vector.extract_strided_slice %32 {offsets = [0, 0, 0], sizes = [4, 8, 8], strides = [1, 1, 1]} : vector<4x8x24xf32> to vector<4x8x8xf32>
    %34 = vector.extract_strided_slice %32 {offsets = [0, 0, 8], sizes = [4, 8, 8], strides = [1, 1, 1]} : vector<4x8x24xf32> to vector<4x8x8xf32>
    %35 = vector.extract_strided_slice %32 {offsets = [0, 0, 16], sizes = [4, 8, 8], strides = [1, 1, 1]} : vector<4x8x24xf32> to vector<4x8x8xf32>
    %36 = tpu.iota {dimensions = array<i32: 0>} : vector<8x8xi32>
    %37 = tpu.iota {dimensions = array<i32: 1>} : vector<8x8xi32>
    %38 = arith.cmpi sge, %36, %37 : vector<8x8xi32>
    %cst_16 = arith.constant 0.000000e+00 : f32
    %cst_17 = arith.constant -1.000000e+30 : f32
    %39 = vector.broadcast %cst_16 : f32 to vector<8x8xf32>
    %40 = vector.broadcast %cst_17 : f32 to vector<8x8xf32>
    %41 = arith.select %38, %39, %40 : vector<8x8xi1>, vector<8x8xf32>
    %42 = vector.shape_cast %41 : vector<8x8xf32> to vector<1x8x8xf32>
    "tpu.trace_start"() <{level = 10 : i32, message = "htd,hsd->hts"}> : () -> ()
    %cst_18 = arith.constant dense<0.000000e+00> : vector<4x8x8xf32>
    %43 = tpu.matmul %33, %34, %cst_18 {dimension_numbers = #tpu.dot_dimension_numbers<[2], [2], [1], [1], [0, 0, 0, 1, 1, 1], [0], [0]>} : vector<4x8x8xf32>, vector<4x8x8xf32>, vector<4x8x8xf32> -> vector<4x8x8xf32>
    "tpu.trace_stop"() : () -> ()
    %cst_19 = arith.constant 0.353553385 : f32
    %44 = vector.broadcast %cst_19 : f32 to vector<4x8x8xf32>
    %45 = arith.mulf %43, %44 : vector<4x8x8xf32>
    %46 = vector.broadcast %42 : vector<1x8x8xf32> to vector<4x8x8xf32>
    %47 = arith.addf %45, %46 : vector<4x8x8xf32>
    %cst_20 = arith.constant dense<0xFF800000> : vector<4x8xf32>
    %48 = vector.multi_reduction <maximumf>, %47, %cst_20 [2] : vector<4x8x8xf32> to vector<4x8xf32>
    %49 = vector.shape_cast %48 : vector<4x8xf32> to vector<4x8x1xf32>
    %50 = vector.broadcast %49 : vector<4x8x1xf32> to vector<4x8x8xf32>
    %51 = arith.subf %47, %50 : vector<4x8x8xf32>
    %52 = math.exp %51 : vector<4x8x8xf32>
    %cst_21 = arith.constant dense<0.000000e+00> : vector<4x8xf32>
    %53 = vector.multi_reduction <add>, %52, %cst_21 [2] : vector<4x8x8xf32> to vector<4x8xf32>
    %54 = vector.shape_cast %53 : vector<4x8xf32> to vector<4x8x1xf32>
    %55 = tpu.reciprocal %54 {approx = true} : vector<4x8x1xf32> -> vector<4x8x1xf32>
    %56 = vector.broadcast %55 : vector<4x8x1xf32> to vector<4x8x8xf32>
    %57 = arith.mulf %52, %56 : vector<4x8x8xf32>
    %58 = vector.shape_cast %57 : vector<4x8x8xf32> to vector<1x4x8x8xf32>
    %c0_22 = arith.constant 0 : index
    %c0_23 = arith.constant 0 : index
    %c0_24 = arith.constant 0 : index
    %c0_25 = arith.constant 0 : index
    %59 = vector.load %arg15[%c0_22, %c0_23, %c0_24, %c0_25] : memref<1x4x8x8xf32, #tpu.memory_space<vmem>>, vector<1x4x8x8xf32>
    tpu.vector_store %arg15[%c0_22, %c0_23, %c0_24, %c0_25], %58 {strides = array<i32>} : memref<1x4x8x8xf32, #tpu.memory_space<vmem>>, vector<1x4x8x8xf32>,
    "tpu.trace_start"() <{level = 10 : i32, message = "hts,hsd->htd"}> : () -> ()
    %cst_26 = arith.constant dense<0.000000e+00> : vector<4x8x8xf32>
    %60 = tpu.matmul %57, %35, %cst_26 {dimension_numbers = #tpu.dot_dimension_numbers<[2], [1], [1], [2], [0, 0, 0, 1, 1, 2], [0], [0]>} : vector<4x8x8xf32>, vector<4x8x8xf32>, vector<4x8x8xf32> -> vector<4x8x8xf32>
    "tpu.trace_stop"() : () -> ()
    %c0_27 = arith.constant 0 : index
    %c0_28 = arith.constant 0 : index
    %c0_29 = arith.constant 0 : index
    %61 = vector.load %arg6[%c0_27, %c0_28, %c0_29] : memref<4x8x32xf32, #tpu.memory_space<vmem>>, vector<4x8x32xf32>
    "tpu.trace_start"() <{level = 10 : i32, message = "htd,hdc->htc"}> : () -> ()
    %cst_30 = arith.constant dense<0.000000e+00> : vector<4x8x32xf32>
    %62 = tpu.matmul %60, %61, %cst_30 {dimension_numbers = #tpu.dot_dimension_numbers<[2], [1], [1], [2], [0, 0, 0, 1, 1, 2], [0], [0]>} : vector<4x8x8xf32>, vector<4x8x32xf32>, vector<4x8x32xf32> -> vector<4x8x32xf32>
    "tpu.trace_stop"() : () -> ()
    %cst_31 = arith.constant dense<0.000000e+00> : vector<8x32xf32>
    %63 = vector.multi_reduction <add>, %62, %cst_31 [0] : vector<4x8x32xf32> to vector<8x32xf32>
    %64 = arith.addf %0, %63 : vector<8x32xf32>
    %c0_32 = arith.constant 0 : index
    %c0_33 = arith.constant 0 : index
    %65 = vector.load %arg7[%c0_32, %c0_33] : memref<1x32xf32, #tpu.memory_space<vmem>>, vector<1x32xf32>
    %66 = vector.broadcast %65 : vector<1x32xf32> to vector<8x32xf32>
    %67 = arith.addf %64, %66 : vector<8x32xf32>
    %c0_34 = arith.constant 0 : index
    %c0_35 = arith.constant 0 : index
    %68 = vector.load %arg8[%c0_34, %c0_35] : memref<1x32xf32, #tpu.memory_space<vmem>>, vector<1x32xf32>
    %c0_36 = arith.constant 0 : index
    %c0_37 = arith.constant 0 : index
    %69 = vector.load %arg9[%c0_36, %c0_37] : memref<1x32xf32, #tpu.memory_space<vmem>>, vector<1x32xf32>
    %cst_38 = arith.constant dense<0.000000e+00> : vector<8xf32>
    %70 = vector.multi_reduction <add>, %67, %cst_38 [1] : vector<8x32xf32> to vector<8xf32>
    %71 = vector.shape_cast %70 : vector<8xf32> to vector<8x1xf32>
    %cst_39 = arith.constant 3.200000e+01 : f32
    %72 = vector.broadcast %cst_39 : f32 to vector<8x1xf32>
    %73 = arith.divf %71, %72 : vector<8x1xf32>
    %74 = vector.broadcast %73 : vector<8x1xf32> to vector<8x32xf32>
    %75 = arith.subf %67, %74 : vector<8x32xf32>
    %76 = arith.mulf %75, %75 : vector<8x32xf32>
    %cst_40 = arith.constant dense<0.000000e+00> : vector<8xf32>
    %77 = vector.multi_reduction <add>, %76, %cst_40 [1] : vector<8x32xf32> to vector<8xf32>
    %78 = vector.shape_cast %77 : vector<8xf32> to vector<8x1xf32>
    %cst_41 = arith.constant 3.200000e+01 : f32
    %79 = vector.broadcast %cst_41 : f32 to vector<8x1xf32>
    %80 = arith.divf %78, %79 : vector<8x1xf32>
    %81 = vector.broadcast %73 : vector<8x1xf32> to vector<8x32xf32>
    %82 = arith.subf %67, %81 : vector<8x32xf32>
    %cst_42 = arith.constant 9.99999974E-6 : f32
    %83 = vector.broadcast %cst_42 : f32 to vector<8x1xf32>
    %84 = arith.addf %80, %83 : vector<8x1xf32>
    %85 = math.rsqrt %84 : vector<8x1xf32>
    %86 = vector.broadcast %85 : vector<8x1xf32> to vector<8x32xf32>
    %87 = arith.mulf %82, %86 : vector<8x32xf32>
    %88 = vector.broadcast %68 : vector<1x32xf32> to vector<8x32xf32>
    %89 = arith.mulf %87, %88 : vector<8x32xf32>
    %90 = vector.broadcast %69 : vector<1x32xf32> to vector<8x32xf32>
    %91 = arith.addf %89, %90 : vector<8x32xf32>
    %c0_43 = arith.constant 0 : index
    %c0_44 = arith.constant 0 : index
    %92 = vector.load %arg10[%c0_43, %c0_44] : memref<32x128xf32, #tpu.memory_space<vmem>>, vector<32x128xf32>
    %cst_45 = arith.constant dense<0.000000e+00> : vector<8x128xf32>
    %93 = tpu.matmul %91, %92, %cst_45 {dimension_numbers = #tpu.dot_dimension_numbers<[1], [0], [0], [1], [0, 0, 1, 1], [], []>} : vector<8x32xf32>, vector<32x128xf32>, vector<8x128xf32> -> vector<8x128xf32>
    %c0_46 = arith.constant 0 : index
    %c0_47 = arith.constant 0 : index
    %94 = vector.load %arg11[%c0_46, %c0_47] : memref<1x128xf32, #tpu.memory_space<vmem>>, vector<1x128xf32>
    %95 = vector.broadcast %94 : vector<1x128xf32> to vector<8x128xf32>
    %96 = arith.addf %93, %95 : vector<8x128xf32>
    %cst_48 = arith.constant 5.000000e-01 : f32
    %97 = vector.broadcast %cst_48 : f32 to vector<8x128xf32>
    %98 = arith.mulf %97, %96 : vector<8x128xf32>
    %cst_49 = arith.constant 4.471500e-02 : f32
    %99 = vector.broadcast %cst_49 : f32 to vector<8x128xf32>
    %100 = arith.mulf %99, %96 : vector<8x128xf32>
    %101 = arith.mulf %100, %96 : vector<8x128xf32>
    %102 = arith.mulf %101, %96 : vector<8x128xf32>
    %103 = arith.addf %96, %102 : vector<8x128xf32>
    %cst_50 = arith.constant 0.797884583 : f32
    %104 = vector.broadcast %cst_50 : f32 to vector<8x128xf32>
    %105 = arith.mulf %104, %103 : vector<8x128xf32>
    %106 = math.tanh %105 : vector<8x128xf32>
    %cst_51 = arith.constant 1.000000e+00 : f32
    %107 = vector.broadcast %cst_51 : f32 to vector<8x128xf32>
    %108 = arith.addf %107, %106 : vector<8x128xf32>
    %109 = arith.mulf %98, %108 : vector<8x128xf32>
    %c0_52 = arith.constant 0 : index
    %c0_53 = arith.constant 0 : index
    %110 = vector.load %arg12[%c0_52, %c0_53] : memref<128x32xf32, #tpu.memory_space<vmem>>, vector<128x32xf32>
    %cst_54 = arith.constant dense<0.000000e+00> : vector<8x32xf32>
    %111 = tpu.matmul %109, %110, %cst_54 {dimension_numbers = #tpu.dot_dimension_numbers<[1], [0], [0], [1], [0, 0, 1, 1], [], []>} : vector<8x128xf32>, vector<128x32xf32>, vector<8x32xf32> -> vector<8x32xf32>
    %112 = arith.addf %67, %111 : vector<8x32xf32>
    %c0_55 = arith.constant 0 : index
    %c0_56 = arith.constant 0 : index
    %113 = vector.load %arg13[%c0_55, %c0_56] : memref<1x32xf32, #tpu.memory_space<vmem>>, vector<1x32xf32>
    %114 = vector.broadcast %113 : vector<1x32xf32> to vector<8x32xf32>
    %115 = arith.addf %112, %114 : vector<8x32xf32>
    %c0_57 = arith.constant 0 : index
    %c0_58 = arith.constant 0 : index
    %116 = vector.load %arg14[%c0_57, %c0_58] : memref<8x32xf32, #tpu.memory_space<vmem>>, vector<8x32xf32>
    tpu.vector_store %arg14[%c0_57, %c0_58], %115 {strides = array<i32>} : memref<8x32xf32, #tpu.memory_space<vmem>>, vector<8x32xf32>,
    return
  }
  func.func @transform_0(%arg0: i32) -> (i32, i32) {
    %c0_i32 = arith.constant 0 : i32
    %c0_i32_0 = arith.constant 0 : i32
    return %arg0, %c0_i32 : i32, i32
  }
  func.func @transform_1(%arg0: i32) -> (i32, i32) {
    %c0_i32 = arith.constant 0 : i32
    %c0_i32_0 = arith.constant 0 : i32
    %c0_i32_1 = arith.constant 0 : i32
    return %c0_i32, %c0_i32_0 : i32, i32
  }
  func.func @transform_2(%arg0: i32) -> (i32, i32) {
    %c0_i32 = arith.constant 0 : i32
    %c0_i32_0 = arith.constant 0 : i32
    %c0_i32_1 = arith.constant 0 : i32
    return %c0_i32, %c0_i32_0 : i32, i32
  }
  func.func @transform_3(%arg0: i32) -> (i32, i32, i32) {
    %c0_i32 = arith.constant 0 : i32
    %c0_i32_0 = arith.constant 0 : i32
    %c0_i32_1 = arith.constant 0 : i32
    %c0_i32_2 = arith.constant 0 : i32
    return %c0_i32, %c0_i32_0, %c0_i32_1 : i32, i32, i32
  }
  func.func @transform_4(%arg0: i32) -> (i32, i32, i32) {
    %c0_i32 = arith.constant 0 : i32
    %c0_i32_0 = arith.constant 0 : i32
    %c0_i32_1 = arith.constant 0 : i32
    %c0_i32_2 = arith.constant 0 : i32
    return %c0_i32, %c0_i32_0, %c0_i32_1 : i32, i32, i32
  }
  func.func @transform_5(%arg0: i32) -> (i32, i32, i32) {
    %c0_i32 = arith.constant 0 : i32
    %c0_i32_0 = arith.constant 0 : i32
    %c0_i32_1 = arith.constant 0 : i32
    %c0_i32_2 = arith.constant 0 : i32
    return %c0_i32, %c0_i32_0, %c0_i32_1 : i32, i32, i32
  }
  func.func @transform_6(%arg0: i32) -> (i32, i32) {
    %c0_i32 = arith.constant 0 : i32
    %c0_i32_0 = arith.constant 0 : i32
    %c0_i32_1 = arith.constant 0 : i32
    return %c0_i32, %c0_i32_0 : i32, i32
  }
  func.func @transform_7(%arg0: i32) -> (i32, i32) {
    %c0_i32 = arith.constant 0 : i32
    %c0_i32_0 = arith.constant 0 : i32
    %c0_i32_1 = arith.constant 0 : i32
    return %c0_i32, %c0_i32_0 : i32, i32
  }
  func.func @transform_8(%arg0: i32) -> (i32, i32) {
    %c0_i32 = arith.constant 0 : i32
    %c0_i32_0 = arith.constant 0 : i32
    %c0_i32_1 = arith.constant 0 : i32
    return %c0_i32, %c0_i32_0 : i32, i32
  }
  func.func @transform_9(%arg0: i32) -> (i32, i32) {
    %c0_i32 = arith.constant 0 : i32
    %c0_i32_0 = arith.constant 0 : i32
    %c0_i32_1 = arith.constant 0 : i32
    return %c0_i32, %c0_i32_0 : i32, i32
  }
  func.func @transform_10(%arg0: i32) -> (i32, i32) {
    %c0_i32 = arith.constant 0 : i32
    %c0_i32_0 = arith.constant 0 : i32
    %c0_i32_1 = arith.constant 0 : i32
    return %c0_i32, %c0_i32_0 : i32, i32
  }
  func.func @transform_11(%arg0: i32) -> (i32, i32) {
    %c0_i32 = arith.constant 0 : i32
    %c0_i32_0 = arith.constant 0 : i32
    %c0_i32_1 = arith.constant 0 : i32
    return %c0_i32, %c0_i32_0 : i32, i32
  }
  func.func @transform_12(%arg0: i32) -> (i32, i32) {
    %c0_i32 = arith.constant 0 : i32
    %c0_i32_0 = arith.constant 0 : i32
    %c0_i32_1 = arith.constant 0 : i32
    return %c0_i32, %c0_i32_0 : i32, i32
  }
  func.func @transform_13(%arg0: i32) -> (i32, i32) {
    %c0_i32 = arith.constant 0 : i32
    %c0_i32_0 = arith.constant 0 : i32
    return %arg0, %c0_i32 : i32, i32
  }
  func.func @transform_14(%arg0: i32) -> (i32, i32, i32, i32) {
    %c0_i32 = arith.constant 0 : i32
    %c0_i32_0 = arith.constant 0 : i32
    %c0_i32_1 = arith.constant 0 : i32
    %c0_i32_2 = arith.constant 0 : i32
    return %arg0, %c0_i32, %c0_i32_0, %c0_i32_1 : i32, i32, i32, i32
  }
}

</mosaic_0001>

<bundles_post_ra>
// kernel: block_forward.1
= control target key start
LH: loop header
LB: loop body
LE: loop exit
PB: predicated region body
PF: predicated region fallthrough
CT: control target
= control target key end

     0   :  { %s3096_s0 = inlined_call_operand.vmem [shape: f32[16,32], index: 0, kind: input, shape index: {}, may-alias: {0,13}]   ;;  %s3097_s1 = inlined_call_operand.vmem [shape: f32[1,32], index: 1, kind: input, shape index: {}]   ;;  %s3098_s2 = inlined_call_operand.vmem [shape: f32[1,32], index: 2, kind: input, shape index: {}]   ;;  %s3099_s3 = inlined_call_operand.vmem [shape: f32[4,32,24], index: 3, kind: input, shape index: {}]   ;;  %s3100_s4 = inlined_call_operand.vmem [shape: f32[4,1,24], index: 4, kind: input, shape index: {}]   ;;  %s3101_s5 = inlined_call_operand.vmem [shape: f32[4,8,32], index: 5, kind: input, shape index: {}]   ;;  %s3102_s6 = inlined_call_operand.vmem [shape: f32[1,32], index: 6, kind: input, shape index: {}]   ;;  %s3103_s7 = inlined_call_operand.vmem [shape: f32[1,32], index: 7, kind: input, shape index: {}]   ;;  %s3104_s8 = inlined_call_operand.vmem [shape: f32[1,32], index: 8, kind: input, shape index: {}]   ;;  %s3105_s9 = inlined_call_operand.vmem [shape: f32[32,128], index: 9, kind: input, shape index: {}]   ;;  %s3106_s10 = inlined_call_operand.vmem [shape: f32[1,128], index: 10, kind: input, shape index: {}]   ;;  %s3107_s11 = inlined_call_operand.vmem [shape: f32[128,32], index: 11, kind: input, shape index: {}]   ;;  %s3108_s12 = inlined_call_operand.vmem [shape: f32[1,32], index: 12, kind: input, shape index: {}]   ;;  %s3109_s13 = inlined_call_operand.vmem [shape: f32[16,32], index: 13, kind: output, shape index: {0}, may-alias: {0,13}]   ;;  %s3110_s14 = inlined_call_operand.hbm [shape: f32[2,4,8,8], index: 14, kind: output, shape index: {1}]  }
   0x1   :  { %3116 = sst [smem:[#allocation8_spill]] %s3096_s0 }
   0x2   :  { %20 = vsyncpa [#allocation3], 0 }
   0x3   :  { %22 = vsyncpa [#allocation3 + $0x1], 0  ;;  %s2677_s29 = smov 0   ;;  %s2679_s30 = smov 0  }
   0x4   :  { %s2681_s15 = smov 0   ;;  %s2683_s16 = smov 0  }
   0x5 LB: > { %3117 = sst [smem:[#allocation5_spill]] %s2587_s15  ;;  %s2698_s17 = sadd.s32 4294967295, %s2591_s16   ;;  %s2591_s16 = sphi %s2683_s16, %s3125_s16   ;;  %s2587_s15 = sphi %s2681_s15, %s3127_s15   ;;  %s2583_s30 = sphi %s2679_s30, %s3129_s30   ;;  %s2579_s29 = sphi %s2677_s29, %s3128_s29  }
   0x6   : > { %s2145_s18 = sadd.s32 4294967294, %s2591_s16   ;;  %s2702_s19 = sadd.s32 1, %s2591_s16  }
   0x7   : > { %3118 = sst [smem:[#allocation6_spill]] %s2702_s19  ;;  %s339_s20 = sadd.s32 1, %s2587_s15 }
   0x8   : > { %s336_s21 = ssub.s32 %s2591_s16, %s2702_s19  ;;  %p349_p0 = scmp.ne.s32.totalorder %s2587_s15, %s2583_s30 }
   0x9   : > { %p337_p1 = scmp.eq.s32.totalorder %s336_s21, 0  ;;  %p350_p2 = scmp.eq.s32.totalorder %s2698_s17, 1 }
   0xa   : > { %p355_p3 = scmp.ne.s32.totalorder %s2583_s30, %s2579_s29  ;;  %p356_p4 = scmp.eq.s32.totalorder %s2145_s18, 1 }
   0xb   : > { %s2713_s22 = scalar_select %p337_p1, %s2587_s15, %s339_s20  }
   0xc   : > { %p2715_p5 = por %p350_p2, %p349_p0  ;;  %p2719_p6 = por %p356_p4, %p355_p3 }
   0xd   : > { %3119 = sst [smem:[#allocation7_spill]] %s2713_s22  ;;  %p2148_p7 = scmp.ge.s32.totalorder %s2591_s16, 1 }
   0xe   : > { %p417_p8 = scmp.lt.s32.totalorder %s2591_s16, 3 }
  0x10   : > { %p418_p9 = pnand %p2148_p7, %p417_p8 }
  0x11   : > { %p466_p10 = scmp.lt.s32.totalorder (!%p418_p9), %s2698_s17, 1  ;;  %vm477_vm0 = vcmask (!%p418_p9), 261120   ;;  %s3122_s0 = sld [smem:[#allocation8_spill]] (!%p418_p9)  ;;  %v506_v7 = vld [vmem:[%s3099_s3] sm:$0xff] (!%p418_p9)  ;;  %v507_v8 = vld [vmem:[%s3099_s3 + $0x8] sm:$0xff] (!%p418_p9)  ;;  %v2593_v10 = vmov (!%p418_p9), 0.0|0.0   ;;  %v833_v62 = vlaneseq (!%p418_p9) }
  0x12   : > { %421 = sbr.rel (%p418_p9) target bundleno = 2433 (0x981), region = 72  ;;  %v518_v9 = vld [vmem:[%s3099_s3 + $0x60] sm:$0xff] (!%p418_p9)  ;;  %2406 = vmatprep.subr.bf16.mxu0 (!%p418_p9), %v2593_v10  ;;  %v2407_v11 = vpack.c.bf16 (!%p418_p9), %v507_v8, %v506_v7  ;;  %2424 = vmatprep.subr.bf16.mxu1 (!%p418_p9), %v2593_v10  ;;  %v519_v12 = vld [vmem:[%s3099_s3 + $0x68] sm:$0xff] (!%p418_p9)  ;;  %v508_v13 = vld [vmem:[%s3099_s3 + $0x10] sm:$0xff] (!%p418_p9)  ;;  %vm2594_vm1 = vmmov (!%p418_p9), 0   ;;  %v2595_v18 = vmov (!%p418_p9), 0.0  }
  0x13   : > { %v509_v14 = vld [vmem:[%s3099_s3 + $0x18] sm:$0xff] (!%p418_p9)  ;;  %v2425_v15 = vpack.c.bf16 (!%p418_p9), %v519_v12, %v518_v9  ;;  %v520_v16 = vld [vmem:[%s3099_s3 + $0x70] sm:$0xff] (!%p418_p9)  ;;  %2264 = vmatprep.mubr.msk.f32.mxu0 (!%p418_p9), %vm2594_vm1, %v2595_v18  ;;  %2297 = vmatprep.mubr.msk.f32.mxu1 (!%p418_p9), %vm2594_vm1, %v2595_v18  ;;  %v2152_v25 = vld [vmem:[%s3097_s1] ss:$0 sm:$0xff] (!%p418_p9)  ;;  %s2596_s19 = smov (!%p418_p9), 120   ;;  %vm842_vm2 = vcmask (!%p418_p9), 64512  }
  0x14   : > { %v521_v17 = vld [vmem:[%s3099_s3 + $0x78] sm:$0xff] (!%p418_p9)  ;;  %2408 = vmatpush3.bf16.msra.mxu0 (!%p418_p9), %v2407_v11  ;;  %v2410_v19 = vpack.c.bf16 (!%p418_p9), %v509_v14, %v508_v13  ;;  %v510_v27 = vld [vmem:[%s3099_s3 + $0x20] sm:$0xff] (!%p418_p9)  ;;  %v511_v28 = vld [vmem:[%s3099_s3 + $0x28] sm:$0xff] (!%p418_p9)  ;;  %v834_v63 = vshrl.u32 (!%p418_p9), %v833_v62, 7  ;;  %s3123_s21 = sand.u32 (!%p418_p9), 1, %s2583_s30  }
  0x15   : > { %2426 = vmatpush3.bf16.msra.mxu1 (!%p418_p9), %v2425_v15  ;;  %2409 = vmatprep.subr.bf16.mxu0 (!%p418_p9), %v2593_v10  ;;  %v2428_v20 = vpack.c.bf16 (!%p418_p9), %v521_v17, %v520_v16  ;;  %v2153_v29 = vld [vmem:[%s3098_s2] ss:$0 sm:$0xff] (!%p418_p9)  ;;  %v2413_v31 = vpack.c.bf16 (!%p418_p9), %v511_v28, %v510_v27  ;;  %v512_v33 = vld [vmem:[%s3099_s3 + $0x30] sm:$0xff] (!%p418_p9)  ;;  %v513_v34 = vld [vmem:[%s3099_s3 + $0x38] sm:$0xff] (!%p418_p9)  ;;  %s3045_s27 = scalar_lea.sflag (!%p418_p9), [#allocation3], %s3123_s21 }
  0x16   : > { %2427 = vmatprep.subr.bf16.mxu1 (!%p418_p9), %v2593_v10  ;;  %v2416_v35 = vpack.c.bf16 (!%p418_p9), %v513_v34, %v512_v33  ;;  %v514_v36 = vld [vmem:[%s3099_s3 + $0x40] sm:$0xff] (!%p418_p9)  ;;  %v515_v37 = vld [vmem:[%s3099_s3 + $0x48] sm:$0xff] (!%p418_p9)  ;;  %v516_v39 = vld [vmem:[%s3099_s3 + $0x50] sm:$0xff] (!%p418_p9) }
  0x17   : > { %v2419_v38 = vpack.c.bf16 (!%p418_p9), %v515_v37, %v514_v36  ;;  %v517_v40 = vld [vmem:[%s3099_s3 + $0x58] sm:$0xff] (!%p418_p9)  ;;  %v2154_v42 = vld [vmem:[%s3100_s4] ss:$0 sm:$0xff] (!%p418_p9)  ;;  %v2155_v48 = vld [vmem:[%s3100_s4 + $0x1] ss:$0 sm:$0xff] (!%p418_p9) }
  0x18   : > { %2411 = vmatpush3.bf16.msra.mxu0 (!%p418_p9), %v2410_v19  ;;  %v2422_v41 = vpack.c.bf16 (!%p418_p9), %v517_v40, %v516_v39  ;;  %v2157_v52 = vld [vmem:[%s3100_s4 + $0x3] ss:$0 sm:$0xff] (!%p418_p9)  ;;  %v2156_v54 = vld [vmem:[%s3100_s4 + $0x2] ss:$0 sm:$0xff] (!%p418_p9) }
  0x19   : > { %s2727_s25 = scalar_select %p466_p10, %s2698_s17, 1  ;;  %2429 = vmatpush3.bf16.msra.mxu1 %v2428_v20  ;;  %2412 = vmatprep.subr.bf16.mxu0 %v2593_v10 }
  0x1a   : > { %2315 = vmatprep.subr.mxu1 %v2595_v18 }
  0x1b   : > { %s3111_s26 = sshll.u32 %s2727_s25, 3 }
  0x1c   : > { %s469_s18 = scalar_lea.vmem %s3122_s0, %s3111_s26  ;;  %s3115_s0 = sand.u32 1, %s2583_s30  }
  0x1d   : > { %v2735_v0 = vld [vmem:[%s469_s18] sm:$0xff]  ;;  %s2598_s18 = smov 112   ;;  %s2149_s15 = sshll.u32 %s3115_s0, 5 }
  0x1e   : > { %v478_v1 = vsel %vm477_vm0, %v2735_v0, 0.0  ;;  %s2189_s26 = sshll.u32 %s2698_s17, 9  ;;  %s2599_s17 = smov [#allocation2]  }
  0x1f   : > { %479 = vadd.xlane.f32.xlu0 %v478_v1  ;;  %v836_v1 = vand.u32 127, %v833_v62  ;;  %v1508_v62 = vld [vmem:[%s3101_s5] sm:$0xff]  ;;  %s3039_s20 = scalar_lea.hbm %s3110_s14, %s2189_s26 }
  0x21   : > { %vm837_vm3 = vcmp.ge.s32.totalorder %v834_v63, %v836_v1  ;;  %v1509_v63 = vld [vmem:[%s3101_s5 + $0x8] sm:$0xff]  ;;  %v1510_v1 = vld [vmem:[%s3101_s5 + $0x10] sm:$0xff] }
  0xac   : > { %v480_v2 = vpop.xlane.xlu0 %479 }
  0xad   : > { %v482_v3 = vmul.f32 0.03125, %v480_v2 }
  0xaf   : > { %v483_v4 = vsub.f32 %v2735_v0, %v482_v3  ;;  %v2597_v3 = vmov -1e+30  }
  0xb1   : > { %v484_v5 = vmul.f32 %v483_v4, %v483_v4 }
  0xb3   : > { %v485_v6 = vsel %vm477_vm0, %v484_v5, 0.0 }
  0xb4   : > { %486 = vadd.xlane.f32.xlu0 %v485_v6 }
 0x141   : > { %v487_v21 = vpop.xlane.xlu0 %486 }
 0x142   : > { %v488_v22 = vmul.f32 0.03125, %v487_v21 }
 0x144   : > { %v489_v23 = vadd.f32 1e-05, %v488_v22 }
 0x146   : > { %2507 = vrsqrt.f32 %v489_v23 }
 0x150   : > { %v2508_v24 = vpop.eup %2507 }
 0x151   : > { %v491_v26 = vmul.f32 %v2508_v24, %v483_v4  ;;  %v838_v4 = vsel %vm837_vm3, 0.0, %v2597_v3 }
 0x153   : > { %v498_v30 = vmul.f32 %v2152_v25, %v491_v26 }
 0x155   : > { %v505_v32 = vadd.f32 %v2153_v29, %v498_v30 }
 0x157   : > { %2265 = vmatmul.mubr.msk.f32.vlgmr.msra.gmra.mrb[0].mxu0 %vm477_vm0, %v505_v32  ;;  %2298 = vmatmul.mubr.msk.f32.vlgmr.msra.gmra.mrb[0].mxu1 %vm477_vm0, %v505_v32 }
 0x158   : > { %2414 = vmatpush3.bf16.msra.mxu0 %v2413_v31  ;;  %2275 = vmatprep.mubr.msk.f32.mxu0 %vm2594_vm1, %v2595_v18 }
 0x159   : > { %2415 = vmatprep.subr.bf16.mxu0 %v2593_v10  ;;  %2317 = vmatprep.mubr.msk.f32.mxu1 %vm2594_vm1, %v2595_v18 }
 0x15c   : > { %2417 = vmatpush3.bf16.msra.mxu0 %v2416_v35 }
 0x15d   : > { %2418 = vmatprep.subr.bf16.mxu0 %v2593_v10 }
 0x15f   : > { %2276 = vmatmul.mubr.msk.f32.vlgmr.msra.gmra.mrb[2].mxu0 %vm477_vm0, %v505_v32 }
 0x160   : > { %2420 = vmatpush3.bf16.msra.mxu0 %v2419_v38  ;;  %2286 = vmatprep.mubr.msk.f32.mxu0 %vm2594_vm1, %v2595_v18 }
 0x161   : > { %2421 = vmatprep.subr.bf16.mxu0 %v2593_v10 }
 0x164   : > { %2423 = vmatpush3.bf16.msra.mxu0 %v2422_v41 }
 0x165   : > { %2300 = vmatprep.subr.mxu0 %v2595_v18 }
 0x167   : > { %2287 = vmatmul.mubr.msk.f32.vlgmr.msra.gmra.mrb[4].mxu0 %vm477_vm0, %v505_v32 }
 0x168   : > { %2302 = vmatprep.mubr.msk.f32.mxu0 %vm2594_vm1, %v2595_v18 }
 0x22a   : > { %v619_v43 = vpop.f32.mrb[0].mxu0  ;;  %v829_v44 = vpop.f32.mrb[0].mxu1 }
 0x22b   : > { %v2824_v45 = vadd.f32 %v2154_v42, %v619_v43  ;;  %v2266_v46 = vpop.f32.mrb[1].mxu0  ;;  %v2299_v47 = vpop.f32.mrb[1].mxu1  ;;  %v2836_v53 = vadd.f32 %v2157_v52, %v829_v44 }
 0x22d   : > { %840 = vrot.lane.b32.xlu1 %v2824_v45, %s2596_s19 }
 0x232   : > { %v689_v49 = vpop.f32.mrb[2].mxu0 }
 0x233   : > { %v2830_v50 = vadd.f32 %v2155_v48, %v689_v49  ;;  %v2277_v51 = vpop.f32.mrb[3].mxu0 }
 0x235   : > { %918 = vrot.lane.b32.xlu1 %v2830_v50, %s2596_s19 }
 0x239   : > { %1072 = vrot.lane.b32.xlu1 %v2836_v53, %s2596_s19 }
 0x23a   : > { %v759_v55 = vpop.f32.mrb[4].mxu0 }
 0x23b   : > { %v2842_v56 = vadd.f32 %v2156_v54, %v759_v55  ;;  %v2288_v57 = vpop.f32.mrb[5].mxu0 }
 0x23d   : > { %995 = vrot.lane.b32.xlu0 %v2842_v56, %s2596_s19  ;;  %s2890_s19 = scalar_lea.vmem [#allocation2], %s2149_s15 }
 0x29f   : > { %v841_v58 = vpop.permute.xlu1 %840 }
 0x2a0   : > { %2301 = vmatpush3.xpose.msk.msra.mxu0 %vm842_vm2, %v841_v58 }
 0x2a1   : > { %2305 = vmatprep.subr.mxu0 %v2595_v18 }
 0x2a3   : > { %2303 = vmatmul.mubr.msk.f32.vlgmr.msra.gmra.mrb[6].mxu0 %vm842_vm2, %v2824_v45 }
 0x2a4   : > { %2307 = vmatprep.mubr.msk.f32.mxu0 %vm2594_vm1, %v2595_v18 }
 0x2a7   : > { %v919_v59 = vpop.permute.xlu1 %918 }
 0x2a8   : > { %2306 = vmatpush3.xpose.msk.msra.mxu0 %vm842_vm2, %v919_v59 }
 0x2a9   : > { %2310 = vmatprep.subr.mxu0 %v2595_v18 }
 0x2ab   : > { %2308 = vmatmul.mubr.msk.f32.vlgmr.msra.gmra.mrb[8].mxu0 %vm842_vm2, %v2830_v50  ;;  %v1073_v60 = vpop.permute.xlu1 %1072 }
 0x2ac   : > { %2316 = vmatpush3.xpose.msk.msra.mxu1 %vm842_vm2, %v1073_v60  ;;  %2312 = vmatprep.mubr.msk.f32.mxu0 %vm2594_vm1, %v2595_v18 }
 0x2ad   : > { %2325 = vmatprep.subr.mxu1 %v2595_v18 }
 0x2af   : > { %2318 = vmatmul.mubr.msk.f32.vlgmr.msra.gmra.mrb[2].mxu1 %vm842_vm2, %v2836_v53  ;;  %v996_v61 = vpop.permute.xlu0 %995 }
 0x2b0   : > { %2311 = vmatpush3.xpose.msk.msra.mxu0 %vm842_vm2, %v996_v61  ;;  %2327 = vmatprep.mubr.msk.f32.mxu1 %vm2594_vm1, %v2595_v18 }
 0x2b1   : > { %2320 = vmatprep.subr.mxu0 %v2595_v18 }
 0x2b3   : > { %2313 = vmatmul.mubr.msk.f32.vlgmr.msra.gmra.mrb[10].mxu0 %vm842_vm2, %v2842_v56 }
 0x2b4   : > { %2322 = vmatprep.mubr.msk.f32.mxu0 %vm2594_vm1, %v2595_v18 }
 0x376   : > { %v913_v2 = vpop.f32.mrb[6].mxu0 }
 0x377   : > { %v1148_v5 = vmul.f32 0.35355338, %v913_v2  ;;  %v2304_v6 = vpop.f32.mrb[7].mxu0 }
 0x378   : > { %v1511_v6 = vld [vmem:[%s3101_s5 + $0x18] sm:$0xff] }
 0x379   : > { %v1152_v7 = vadd.f32 %v1148_v5, %v838_v4 }
 0x37b   : > { %v1156_v8 = vsel %vm842_vm2, %v1152_v7, -inf }
 0x37c   : > { %1157 = vmax.xlane.f32.xlu1 %v1156_v8 }
 0x37e   : > { %v990_v9 = vpop.f32.mrb[8].mxu0 }
 0x37f   : > { %v1149_v11 = vmul.f32 0.35355338, %v990_v9  ;;  %v2309_v12 = vpop.f32.mrb[9].mxu0 }
 0x381   : > { %v1153_v13 = vadd.f32 %v1149_v11, %v838_v4 }
 0x382   : > { %v1144_v14 = vpop.f32.mrb[2].mxu1 }
 0x383   : > { %v2319_v15 = vpop.f32.mrb[3].mxu1  ;;  %v1159_v16 = vsel %vm842_vm2, %v1153_v13, -inf  ;;  %v1151_v19 = vmul.f32 0.35355338, %v1144_v14 }
 0x384   : > { %1160 = vmax.xlane.f32.xlu0 %v1159_v16 }
 0x385   : > { %v1155_v24 = vadd.f32 %v1151_v19, %v838_v4 }
 0x386   : > { %v1067_v17 = vpop.f32.mrb[10].mxu0 }
 0x387   : > { %v1150_v20 = vmul.f32 0.35355338, %v1067_v17  ;;  %v2314_v21 = vpop.f32.mrb[11].mxu0  ;;  %v1165_v25 = vsel %vm842_vm2, %v1155_v24, -inf }
 0x389   : > { %v1154_v22 = vadd.f32 %v1150_v20, %v838_v4 }
 0x38b   : > { %v1162_v23 = vsel %vm842_vm2, %v1154_v22, -inf }
 0x38c   : > { %1163 = vmax.xlane.f32.xlu1 %v1162_v23 }
 0x390   : > { %1166 = vmax.xlane.f32.xlu1 %v1165_v25 }
 0x39a   : > { %1204 = vrot.lane.b32.xlu0 %v2824_v45, %s2598_s18 }
 0x3a1   : > { %1280 = vrot.lane.b32.xlu1 %v2830_v50, %s2598_s18 }
 0x409   : > { %v1158_v26 = vpop.xlane.xlu1 %1157 }
 0x40a   : > { %v1168_v27 = vsub.f32 %v1152_v7, %v1158_v26 }
 0x40c   : > { %v1172_v28 = vmul.f32 1.442695, %v1168_v27 }
 0x40e   : > { %2509 = vpow2.f32 %v1172_v28 }
 0x411   : > { %v1161_v29 = vpop.xlane.xlu0 %1160 }
 0x412   : > { %v1169_v35 = vsub.f32 %v1153_v13, %v1161_v29 }
 0x414   : > { %v1174_v39 = vmul.f32 1.442695, %v1169_v35 }
 0x415   : > { %v1205_v30 = vpop.permute.xlu0 %1204 }
 0x416   : > { %2321 = vmatpush3.msra.mxu0 %v1205_v30 }
 0x417   : > { %2330 = vmatprep.subr.mxu0 %v2595_v18 }
 0x418   : > { %v2510_v31 = vpop.eup %2509 }
 0x419   : > { %v1164_v32 = vpop.xlane.xlu1 %1163  ;;  %v1180_v33 = vsel %vm842_vm2, %v2510_v31, 0.0 }
 0x41a   : > { %v1170_v34 = vsub.f32 %v1154_v22, %v1164_v32  ;;  %1181 = vadd.xlane.f32.xlu1 %v1180_v33 }
 0x41c   : > { %v1176_v36 = vmul.f32 1.442695, %v1170_v34 }
 0x41d   : > { %v1167_v37 = vpop.xlane.xlu1 %1166 }
 0x41e   : > { %2511 = vpow2.f32 %v1176_v36  ;;  %v1171_v38 = vsub.f32 %v1155_v24, %v1167_v37  ;;  %v1849_v36 = vld [vmem:[%s3105_s9] sm:$0xff] }
 0x420   : > { %v1178_v40 = vmul.f32 1.442695, %v1171_v38  ;;  %v1851_v38 = vld [vmem:[%s3105_s9 + $0x10] sm:$0xff] }
 0x421   : > { %v1281_v41 = vpop.permute.xlu1 %1280 }
 0x422   : > { %2513 = vpow2.f32 %v1178_v40  ;;  %2326 = vmatpush3.msra.mxu1 %v1281_v41  ;;  %v1942_v41 = vld [vmem:[%s3107_s11] sm:$0xff] }
 0x423   : > { %2335 = vmatprep.subr.mxu1 %v2595_v18  ;;  %2515 = vpow2.f32 %v1174_v39  ;;  %v1852_v39 = vld [vmem:[%s3105_s9 + $0x18] sm:$0xff] }
 0x424   : > { %v2434_v40 = vpack.c.bf16 %v1852_v39, %v1851_v38 }
 0x428   : > { %v2512_v42 = vpop.eup %2511 }
 0x429   : > { %v1186_v43 = vsel %vm842_vm2, %v2512_v42, 0.0 }
 0x42a   : > { %1187 = vadd.xlane.f32.xlu0 %v1186_v43 }
 0x42c   : > { %v2514_v44 = vpop.eup %2513 }
 0x42d   : > { %v1189_v45 = vsel %vm842_vm2, %v2514_v44, 0.0  ;;  %v2516_v46 = vpop.eup %2515 }
 0x42e   : > { %1190 = vadd.xlane.f32.xlu1 %v1189_v45  ;;  %v1183_v47 = vsel %vm842_vm2, %v2516_v46, 0.0 }
 0x432   : > { %1184 = vadd.xlane.f32.xlu1 %v1183_v47 }
 0x440   : > { %1432 = vrot.lane.b32.xlu0 %v2836_v53, %s2598_s18 }
 0x443   : > { %1356 = vrot.lane.b32.xlu1 %v2842_v56, %s2598_s18  ;;  %s2059_s18 = sshll.u32 %s2890_s19, 4  ;;  %s3041_s18 = int_to_ptr.vmem [resolvable:$true] %s2059_s18 }
 0x444   : > { %s2529_s28 = scalar_lea.vmem %s3041_s18, 512 }
 0x445   : > { %p2530_p11 = scmp.ne.s32.totalorder %s3041_s18, %s2529_s28 }
 0x447   : > { %p2531_p12 = pnand %p2530_p11, %p2715_p5 }
 0x449   : > { %p2532_p13 = pneg %p2531_p12 }
 0x4a7   : > { %v1182_v48 = vpop.xlane.xlu1 %1181 }
 0x4a8   : > { %2517 = vrcp.f32 %v1182_v48  ;;  %v2179_v48 = vld [vmem:[%s3103_s7] ss:$0 sm:$0xff] }
 0x4b2   : > { %v2518_v49 = vpop.eup %2517 }
 0x4b3   : > { %v1196_v50 = vmul.f32 %v2518_v49, %v2510_v31 }
 0x4b5   : > { %1200 = vst.msk [vmem:[%s2890_s19] sm:$0xff] %vm842_vm2, %v1196_v50  ;;  %2323 = vmatmul.mubr.msk.f32.vlgmr.msra.gmra.mrb[12].mxu0 %vm842_vm2, %v1196_v50  ;;  %v2180_v50 = vld [vmem:[%s3104_s8] ss:$0 sm:$0xff] }
 0x4b6   : > { %2332 = vmatprep.mubr.msk.f32.mxu0 %vm2594_vm1, %v2595_v18 }
 0x4b7   : > { %v1188_v51 = vpop.xlane.xlu0 %1187 }
 0x4b8   : > { %2519 = vrcp.f32 %v1188_v51 }
 0x4bb   : > { %v1191_v52 = vpop.xlane.xlu1 %1190  ;;  %v1433_v61 = vpop.permute.xlu0 %1432 }
 0x4bc   : > { %2521 = vrcp.f32 %v1191_v52 }
 0x4bf   : > { %v1185_v53 = vpop.xlane.xlu1 %1184 }
 0x4c0   : > { %2523 = vrcp.f32 %v1185_v53  ;;  %v1944_v53 = vld [vmem:[%s3107_s11 + $0x10] sm:$0xff] }
 0x4c2   : > { %v2520_v54 = vpop.eup %2519 }
 0x4c3   : > { %v1198_v55 = vmul.f32 %v2520_v54, %v2512_v42  ;;  %v1357_v56 = vpop.permute.xlu1 %1356  ;;  %v1943_v42 = vld [vmem:[%s3107_s11 + $0x8] sm:$0xff]  ;;  %v1945_v54 = vld [vmem:[%s3107_s11 + $0x18] sm:$0xff] }
 0x4c4   : > { %2331 = vmatpush3.msra.mxu0 %v1357_v56  ;;  %v2437_v43 = vpack.c.bf16 %v1943_v42, %v1942_v41  ;;  %v1946_v56 = vld [vmem:[%s3107_s11 + $0x20] sm:$0xff] }
 0x4c5   : > { %1202 = vst.msk [vmem:[%s2890_s19 + $0x10] sm:$0xff] %vm842_vm2, %v1198_v55  ;;  %2333 = vmatmul.mubr.msk.f32.vlgmr.msra.gmra.mrb[14].mxu0 %vm842_vm2, %v1198_v55  ;;  %2340 = vmatprep.subr.mxu0 %v2595_v18  ;;  %v2440_v55 = vpack.c.bf16 %v1945_v54, %v1944_v53 }
 0x4c6   : > { %v2522_v57 = vpop.eup %2521  ;;  %2342 = vmatprep.mubr.msk.f32.mxu0 %vm2594_vm1, %v2595_v18  ;;  %2341 = vmatpush3.msra.mxu0 %v1508_v62  ;;  %v1950_v62 = vld [vmem:[%s3107_s11 + $0x40] sm:$0xff] }
 0x4c7   : > { %v1199_v58 = vmul.f32 %v2522_v57, %v2514_v44  ;;  %2350 = vmatprep.subr.mxu0 %v2595_v18  ;;  %v1947_v57 = vld [vmem:[%s3107_s11 + $0x28] sm:$0xff] }
 0x4c9   : > { %1203 = vst.msk [vmem:[%s2890_s19 + $0x18] sm:$0xff] %vm842_vm2, %v1199_v58 }
 0x4ca   : > { %v2524_v59 = vpop.eup %2523 }
 0x4cb   : > { %v1197_v60 = vmul.f32 %v2524_v59, %v2516_v46  ;;  %v1948_v59 = vld [vmem:[%s3107_s11 + $0x30] sm:$0xff] }
 0x4cd   : > { %1201 = vst.msk [vmem:[%s2890_s19 + $0x8] sm:$0xff] %vm842_vm2, %v1197_v60  ;;  %2328 = vmatmul.mubr.msk.f32.vlgmr.msra.gmra.mrb[4].mxu1 %vm842_vm2, %v1197_v60  ;;  %v1949_v60 = vld [vmem:[%s3107_s11 + $0x38] sm:$0xff]  ;;  %s2533_s19 = sshll.u32 %s2599_s17, 4  ;;  %s2534_s19 = int_to_ptr.vmem [resolvable:$false] %s2533_s19 }
 0x4ce   : > { %2336 = vmatpush3.msra.mxu1 %v1433_v61  ;;  %2337 = vmatprep.mubr.msk.f32.mxu1 %vm2594_vm1, %v2595_v18  ;;  %v2446_v61 = vpack.c.bf16 %v1949_v60, %v1948_v59  ;;  %s2535_s0 = scalar_lea.vmem %s2534_s19, 1024  ;;  %p2536_p0 = scmp.lt.s32.totalorder %s3041_s18, %s2534_s19 }
 0x4cf   : > { %2345 = vmatprep.subr.mxu1 %v2595_v18  ;;  %p2537_p1 = scmp.lt.s32.totalorder %s2535_s0, %s2529_s28 }
 0x4d1   : > { %2338 = vmatmul.mubr.msk.f32.vlgmr.msra.gmra.mrb[6].mxu1 %vm842_vm2, %v1199_v58  ;;  %v2443_v58 = vpack.c.bf16 %v1947_v57, %v1946_v56  ;;  %p2538_p2 = por %p2537_p1, %p2536_p0 }
 0x4d2   : > { %2347 = vmatprep.mubr.msk.f32.mxu1 %vm2594_vm1, %v2595_v18  ;;  %2346 = vmatpush3.msra.mxu1 %v1509_v63  ;;  %v1951_v63 = vld [vmem:[%s3107_s11 + $0x48] sm:$0xff] }
 0x4d3   : > { %2355 = vmatprep.subr.mxu1 %v2595_v18  ;;  %p2539_p3 = pnand %p2538_p2, %p2532_p13 }
 0x588   : > { %v1276_v2 = vpop.f32.mrb[12].mxu0 }
 0x589   : > { %v2324_v3 = vpop.f32.mrb[13].mxu0  ;;  %2343 = vmatmul.mubr.msk.f32.vlgmr.msra.gmra.mrb[16].mxu0 %vm842_vm2, %v1276_v2  ;;  %v1952_v2 = vld [vmem:[%s3107_s11 + $0x50] sm:$0xff] }
 0x58a   : > { %2351 = vmatpush3.msra.mxu0 %v1510_v1  ;;  %2352 = vmatprep.mubr.msk.f32.mxu0 %vm2594_vm1, %v2595_v18  ;;  %v2449_v1 = vpack.c.bf16 %v1951_v63, %v1950_v62  ;;  %v1953_v3 = vld [vmem:[%s3107_s11 + $0x58] sm:$0xff] }
 0x58b   : > { %2430 = vmatprep.subr.bf16.mxu0 %v2593_v10 }
 0x598   : > { %v1428_v4 = vpop.f32.mrb[14].mxu0 }
 0x599   : > { %v2334_v5 = vpop.f32.mrb[15].mxu0  ;;  %2353 = vmatmul.mubr.msk.f32.vlgmr.msra.gmra.mrb[18].mxu0 %vm842_vm2, %v1428_v4  ;;  %v2452_v4 = vpack.c.bf16 %v1953_v3, %v1952_v2 }
 0x59a   : > { %2368 = vmatprep.mubr.msk.f32.mxu0 %vm2594_vm1, %v2595_v18  ;;  %v1954_v5 = vld [vmem:[%s3107_s11 + $0x60] sm:$0xff] }
 0x5a0   : > { %v1352_v7 = vpop.f32.mrb[4].mxu1 }
 0x5a1   : > { %v2329_v8 = vpop.f32.mrb[5].mxu1  ;;  %2348 = vmatmul.mubr.msk.f32.vlgmr.msra.gmra.mrb[8].mxu1 %vm842_vm2, %v1352_v7 }
 0x5a2   : > { %2356 = vmatpush3.msra.mxu1 %v1511_v6  ;;  %2357 = vmatprep.mubr.msk.f32.mxu1 %vm2594_vm1, %v2595_v18  ;;  %v1955_v6 = vld [vmem:[%s3107_s11 + $0x68] sm:$0xff]  ;;  %v1956_v8 = vld [vmem:[%s3107_s11 + $0x70] sm:$0xff] }
 0x5a3   : > { %2436 = vmatprep.subr.bf16.mxu1 %v2593_v10  ;;  %v2455_v7 = vpack.c.bf16 %v1955_v6, %v1954_v5 }
 0x5a4   : > { %v1504_v9 = vpop.f32.mrb[6].mxu1 }
 0x5a5   : > { %v2339_v11 = vpop.f32.mrb[7].mxu1  ;;  %2358 = vmatmul.mubr.msk.f32.vlgmr.msra.gmra.mrb[10].mxu1 %vm842_vm2, %v1504_v9  ;;  %v1957_v9 = vld [vmem:[%s3107_s11 + $0x78] sm:$0xff] }
 0x5a6   : > { %2403 = vmatprep.mubr.msk.f32.mxu1 %vm2594_vm1, %v2595_v18  ;;  %v2178_v18 = vld [vmem:[%s3102_s6] ss:$0 sm:$0xff]  ;;  %2438 = vmatpush3.bf16.msra.mxu1 %v2437_v43  ;;  %v2458_v11 = vpack.c.bf16 %v1957_v9, %v1956_v8 }
 0x5a7   : > { %2439 = vmatprep.subr.bf16.mxu1 %v2593_v10 }
 0x5aa   : > { %2441 = vmatpush3.bf16.msra.mxu1 %v2440_v55 }
 0x5ab   : > { %2442 = vmatprep.subr.bf16.mxu1 %v2593_v10 }
 0x5ae   : > { %2444 = vmatpush3.bf16.msra.mxu1 %v2443_v58 }
 0x5af   : > { %2445 = vmatprep.subr.bf16.mxu1 %v2593_v10 }
 0x5b2   : > { %2447 = vmatpush3.bf16.msra.mxu1 %v2446_v61 }
 0x5b3   : > { %2448 = vmatprep.subr.bf16.mxu1 %v2593_v10 }
 0x5b6   : > { %2450 = vmatpush3.bf16.msra.mxu1 %v2449_v1 }
 0x5b7   : > { %2451 = vmatprep.subr.bf16.mxu1 %v2593_v10 }
 0x5ba   : > { %2453 = vmatpush3.bf16.msra.mxu1 %v2452_v4 }
 0x5bb   : > { %2454 = vmatprep.subr.bf16.mxu1 %v2593_v10 }
 0x5be   : > { %2456 = vmatpush3.bf16.msra.mxu1 %v2455_v7 }
 0x5bf   : > { %2457 = vmatprep.subr.bf16.mxu1 %v2593_v10 }
 0x5c2   : > { %2459 = vmatpush3.bf16.msra.mxu1 %v2458_v11 }
 0x65c   : > { %v1581_v12 = vpop.f32.mrb[16].mxu0 }
 0x65d   : > { %v2344_v13 = vpop.f32.mrb[17].mxu0  ;;  %v1804_v17 = vsel %vm477_vm0, %v1581_v12, 0.0  ;;  %v2181_v12 = vld [vmem:[%s3106_s10] ss:$0 sm:$0xff] }
 0x66c   : > { %v1727_v14 = vpop.f32.mrb[18].mxu0 }
 0x66d   : > { %v2354_v15 = vpop.f32.mrb[19].mxu0  ;;  %v1807_v22 = vsel %vm477_vm0, %v1727_v14, 0.0 }
 0x674   : > { %v1654_v16 = vpop.f32.mrb[8].mxu1 }
 0x675   : > { %v1805_v19 = vsel %vm477_vm0, %v1654_v16, 0.0  ;;  %v2349_v20 = vpop.f32.mrb[9].mxu1 }
 0x676   : > { %v1806_v21 = vadd.f32 %v1805_v19, %v1804_v17 }
 0x678   : > { %v1800_v23 = vpop.f32.mrb[10].mxu1  ;;  %v1808_v24 = vadd.f32 %v1807_v22, %v1806_v21 }
 0x679   : > { %v1809_v25 = vsel %vm477_vm0, %v1800_v23, 0.0  ;;  %v2359_v26 = vpop.f32.mrb[11].mxu1 }
 0x67a   : > { %v1810_v27 = vadd.f32 %v1809_v25, %v1808_v24 }
 0x67c   : > { %v1811_v28 = vadd.f32 %v1810_v27, %v2735_v0  ;;  %v1850_v0 = vld [vmem:[%s3105_s9 + $0x8] sm:$0xff] }
 0x67d   : > { %v2431_v37 = vpack.c.bf16 %v1850_v0, %v1849_v36 }
 0x67e   : > { %v2950_v29 = vadd.f32 %v2178_v18, %v1811_v28 }
 0x67f   : > { %2432 = vmatpush3.bf16.msra.mxu0 %v2431_v37 }
 0x680   : > { %v1822_v30 = vsel %vm477_vm0, %v2950_v29, 0.0  ;;  %2433 = vmatprep.subr.bf16.mxu0 %v2593_v10 }
 0x681   : > { %1823 = vadd.xlane.f32.xlu1 %v1822_v30 }
 0x683   : > { %2435 = vmatpush3.bf16.msra.mxu0 %v2434_v40 }
 0x70e   : > { %v1824_v31 = vpop.xlane.xlu1 %1823 }
 0x70f   : > { %v1825_v32 = vmul.f32 0.03125, %v1824_v31 }
 0x711   : > { %v1826_v33 = vsub.f32 %v2950_v29, %v1825_v32 }
 0x713   : > { %v1827_v34 = vmul.f32 %v1826_v33, %v1826_v33 }
 0x715   : > { %v1828_v35 = vsel %vm477_vm0, %v1827_v34, 0.0 }
 0x716   : > { %1829 = vadd.xlane.f32.xlu0 %v1828_v35 }
 0x7a3   : > { %v1830_v44 = vpop.xlane.xlu0 %1829 }
 0x7a4   : > { %v1831_v45 = vmul.f32 0.03125, %v1830_v44 }
 0x7a6   : > { %v1832_v46 = vadd.f32 1e-05, %v1831_v45 }
 0x7a8   : > { %2525 = vrsqrt.f32 %v1832_v46 }
 0x7b2   : > { %v2526_v47 = vpop.eup %2525 }
 0x7b3   : > { %v1834_v49 = vmul.f32 %v2526_v47, %v1826_v33 }
 0x7b5   : > { %v1841_v51 = vmul.f32 %v2179_v48, %v1834_v49 }
 0x7b7   : > { %v1848_v52 = vadd.f32 %v2180_v50, %v1841_v51 }
 0x7b9   : > { %2369 = vmatmul.mubr.msk.f32.vlgmr.msra.gmra.mrb[20].mxu0 %vm477_vm0, %v1848_v52 }
 0x88c   : > { %v1929_v13 = vpop.f32.mrb[20].mxu0 }
 0x88d   : > { %v1930_v14 = vadd.f32 %v2181_v12, %v1929_v13  ;;  %v2370_v15 = vpop.f32.mrb[21].mxu0 }
 0x88f   : > { %v1934_v16 = vmul.f32 0.044715, %v1930_v14  ;;  %v1933_v10 = vmul.f32 0.5, %v1930_v14 }
 0x891   : > { %v1935_v17 = vmul.f32 %v1934_v16, %v1930_v14 }
 0x893   : > { %v1936_v19 = vmul.f32 %v1935_v17, %v1930_v14 }
 0x895   : > { %v1937_v20 = vadd.f32 %v1936_v19, %v1930_v14 }
 0x897   : > { %v1938_v21 = vmul.f32 0.7978846, %v1937_v20 }
 0x899   : > { %2527 = vtanh.f32 %v1938_v21 }
 0x8a3   : > { %v2528_v22 = vpop.eup %2527 }
 0x8a4   : > { %v1940_v23 = vadd.f32 1.0, %v2528_v22 }
 0x8a6   : > { %v1941_v24 = vmul.f32 %v1940_v23, %v1933_v10 }
 0x8a8   : > { %2404 = vmatmul.mubr.f32.vlgmr.msra.gmra.mrb[12].mxu1 %v1941_v24 }
 0x8a9   : > { %2542 = shalt.err (!%p2539_p3)
}
 0x8aa   : > { %s2543_s26 = scalar_lea.hbm %s3039_s20, 512  ;;  %s2547_s21 = scalar_lea.hbm %s3110_s14, 1024 }
 0x8ab   : > { %p2544_p4 = scmp.ne.s32.totalorder %s3039_s20, %s2543_s26  ;;  %p2548_p9 = scmp.lt.u32.totalorder %s3039_s20, %s3110_s14 }
 0x8ac   : > { %p2549_p10 = scmp.lt.u32.totalorder %s2547_s21, %s2543_s26  ;;  %p2551_p12 = scmp.lt.u32.totalorder %s2543_s26, %s3039_s20 }
 0x8ad   : > { %p2545_p7 = pnand %p2544_p4, %p2715_p5 }
 0x8ae   : > { %p2550_p11 = por %p2549_p10, %p2548_p9 }
 0x8af   : > { %p2546_p8 = pneg %p2545_p7 }
 0x8b0   : > { %p2552_p13 = por %p2551_p12, %p2550_p11 }
 0x8b2   : > { %p2553_p0 = pnand %p2552_p13, %p2546_p8 }
 0x8b4   : > { %2556 = shalt.err (!%p2553_p0)
}
 0x8b5   : > { %s2600_s28 = smov 128   ;;  %s2601_s0 = smov 8   ;;  %v2183_v26 = vld [vmem:[%s3108_s12] ss:$0 sm:$0xff] }
 0x8b6   : > { %2460 = dma.vmem_to_hbm [thread:$0]  (%p2715_p5), %s3041_s18, 512, %s3039_s20, %s3045_s27, %s2600_s28, %s2600_s28, %s2601_s0  }
 0x8b7   : > { %s3124_s26 = sshll.u32 %s2727_s25, 3 }
 0x8b8   : > { %s473_s19 = scalar_lea.vmem %s3109_s13, %s3124_s26 }
 0x97b   : > { %v2024_v25 = vpop.f32.mrb[12].mxu1 }
 0x97c   : > { %v2028_v27 = vadd.f32 %v2024_v25, %v2950_v29  ;;  %v2405_v18 = vpop.f32.mrb[13].mxu1 }
 0x97e   : > { %v2036_v28 = vadd.f32 %v2183_v26, %v2028_v27 }
 0x980   : > { %2037 = vst.msk [vmem:[%s473_s19] sm:$0xff] %vm477_vm0, %v2036_v28 }
 0x981 PF: > { %p2466_p5 = scmp.ge.s32.totalorder %s2591_s16, 2  ;;  %s2081_s23 = sand.u32 1, %s2579_s29  }
 0x982   : > { %s2082_s18 = scalar_lea.sflag [#allocation3], %s2081_s23 }
 0x983   : > { %p2463_p1 = pnand %p2466_p5, %p2719_p6 }
 0x985   : > { %2574 = dma.done.wait (!%p2463_p1), %s2082_s18, 512  }
 0x986   : > { %2576 = vsyncadd (!%p2463_p1), %s2082_s18, 4294966784  ;;  %s3125_s16 = sld [smem:[#allocation6_spill]]  ;;  %s3126_s25 = sld [smem:[#allocation5_spill]] }
 0x987   : > { %s3127_s15 = sld [smem:[#allocation7_spill]]  ;;  %s3128_s29 = smov %s2583_s30 }
 0x98c   : > { %p25_p2 = scmp.ge.s32.totalorder %s3125_s16, 4   ;;  %s3129_s30 = smov %s3126_s25 }
 0x98e   :  { %27 = sbr.rel (!%p25_p2) target bundleno = 5 (0x5), region = 119 }
 0x995   :  { %2087 = vsyncpa [#allocation3], 1 }
 0x996   :  { %2089 = vsyncpa [#allocation3 + $0x1], 1 }

</bundles_post_ra>
